<compile_context>
chip_gen: v6e
topology: v6e:2x2x1
jax: 0.10.0
libtpu: 0.0.40
codegen_flags: <defaults>
</compile_context>

<pallas_src>
import functools

import jax
import jax.numpy as jnp
from jax.experimental import pallas as pl
from jax.experimental.pallas import tpu as pltpu


def _round_up(n, m):
    return ((n + m - 1) // m) * m


def _cdiv(a, b):
    return (a + b - 1) // b


def _vmem_capacity_bytes():
    """Per-TensorCore VMEM capacity, with a v7x-safe fallback."""
    try:
        info = pltpu.get_tpu_info()
        cap = getattr(info, "vmem_capacity_bytes", None)
        if cap:
            return int(cap)
    except Exception:
        pass
    return 64 << 20  # conservative: v7x has 64 MiB / TensorCore


def _v_kernel(x_ref, w1_ref, w2_ref, w3_ref, w4_ref, b_ref, o_ref, *,
              precision=None):
    """Full 4-layer MLP forward for one batch tile, entirely in VMEM."""
    cdt = w1_ref.dtype                    # compute dtype for MXU operands
    bias = b_ref[...]                     # (4, 128) f32, packed biases

    x = x_ref[...]                                            # (tile, dim_obs)

    h = jnp.dot(x, w1_ref[...], preferred_element_type=jnp.float32,
                precision=precision)
    h = jnp.maximum(h + bias[0:1, :], 0.0)                    # (tile, 128) f32

    h = jnp.dot(h.astype(cdt), w2_ref[...],
                preferred_element_type=jnp.float32, precision=precision)
    h = jnp.maximum(h + bias[1:2, :64], 0.0)                  # (tile, 64) f32

    h = jnp.dot(h.astype(cdt), w3_ref[...],
                preferred_element_type=jnp.float32, precision=precision)
    h = jnp.maximum(h + bias[2:3, :32], 0.0)                  # (tile, 32) f32

    # Final 32 -> 1 layer, lane-dense: contract w4_row (1, 32) against h
    # (tile, 32) on their LAST dims -> (1, tile).  Batch lands on the lane
    # axis, so the store is an unmasked full-lane vst (no (tile, 1) column
    # stores, no in-kernel transpose of the output).
    out = jax.lax.dot_general(
        w4_ref[...], h.astype(cdt),
        dimension_numbers=(((1,), (1,)), ((), ())),
        preferred_element_type=jnp.float32,
        precision=precision,
    ) + bias[3:4, 0:1]                                        # (1, tile)

    o_ref[...] = out.astype(o_ref.dtype)


@functools.partial(jax.jit, static_argnames=("tile_b", "use_bf16", "precision"))
def v_forward(obs, params, *, tile_b=None, use_bf16=False, precision=None):
    """Pallas forward pass of the IQL V network.

    obs:      [B, dim_observation] float32
    params:   dict with w1..w3 ([in, out]), w4 ([32, 1]) and b1..b4 ([1, out])
    tile_b:   optional max batch-tile override (rounded down to 256)
    use_bf16: opt-in bf16 matmul operands (f32 accumulation / elementwise)
    returns:  [B, 1] float32
    """
    B, dim_obs = obs.shape
    in_bytes = 2 if use_bf16 else 4

    # ---- tile selection (trace-time Python) -------------------------------
    cap = _vmem_capacity_bytes()
    # ~48 MiB budget on v7x (64 MiB VMEM), ~96 MiB on v5e/v6e (128 MiB VMEM).
    budget = min((cap * 3) // 4, 96 << 20)

    w_elems = dim_obs * 128 + 128 * 64 + 64 * 32 + 32
    weights_bytes = 2 * (w_elems * in_bytes + 4 * 128 * 4)    # 2x: double buffer
    per_row = (2 * dim_obs * in_bytes        # double-buffered obs tile
               + dim_obs * 4                 # obs widened to f32 in vregs
               + (128 + 64 + 32) * 4         # h1..h3 temporaries (f32)
               + 2 * 4)                      # double-buffered lane-dense output
    tile_max = (budget - weights_bytes - (2 << 20)) // per_row
    tile_max = max(256, min(16384, (tile_max // 256) * 256))
    if tile_b is not None:
        tile_max = max(256, min(tile_max, (int(tile_b) // 256) * 256))

    # Padding-minimizing tiling: fix the tile count, then the smallest
    # 256-aligned tile that covers B (<= one 256-row remainder of padding).
    num_tiles = max(1, _cdiv(B, tile_max))
    if B > 256:
        num_tiles = max(num_tiles, 2)   # >=2 parallel steps for v7x's 2 TCs
    tile = _round_up(_cdiv(B, num_tiles), 256)
    b_pad = num_tiles * tile

    vmem_needed = per_row * tile + weights_bytes
    vmem_limit = int(min(cap - (4 << 20),
                         max(32 << 20, vmem_needed + (8 << 20))))

    # ---- operand preparation ----------------------------------------------
    if b_pad != B:
        obs = jnp.pad(obs, ((0, b_pad - B), (0, 0)))

    w1, w2, w3 = params["w1"], params["w2"], params["w3"]
    w4_row = params["w4"].reshape(1, -1)         # (32, 1) column -> (1, 32) row
    if use_bf16:
        obs = obs.astype(jnp.bfloat16)
        w1, w2, w3, w4_row = [w.astype(jnp.bfloat16)
                              for w in (w1, w2, w3, w4_row)]

    # Pack the four biases into one (4, 128) f32 block (fewer pipelined inputs).
    bias = jnp.zeros((4, 128), jnp.float32)
    bias = bias.at[0, :128].set(params["b1"].reshape(-1).astype(jnp.float32))
    bias = bias.at[1, :64].set(params["b2"].reshape(-1).astype(jnp.float32))
    bias = bias.at[2, :32].set(params["b3"].reshape(-1).astype(jnp.float32))
    bias = bias.at[3, 0].set(params["b4"].reshape(-1)[0].astype(jnp.float32))

    full = lambda shape: pl.BlockSpec(shape, lambda i: (0,) * len(shape))
    kernel = functools.partial(_v_kernel, precision=precision)

    out = pl.pallas_call(
        kernel,
        out_shape=jax.ShapeDtypeStruct((1, b_pad), jnp.float32),
        grid_spec=pltpu.PrefetchScalarGridSpec(
            num_scalar_prefetch=0,
            grid=(num_tiles,),
            in_specs=[
                pl.BlockSpec((tile, dim_obs), lambda i: (i, 0)),   # obs tile
                full(w1.shape), full(w2.shape), full(w3.shape),
                full(w4_row.shape), full(bias.shape),
            ],
            out_specs=pl.BlockSpec((1, tile), lambda i: (0, i)),
        ),
        compiler_params=pltpu.CompilerParams(
            dimension_semantics=("parallel",),
            vmem_limit_bytes=vmem_limit,
        ),
    )(obs, w1, w2, w3, w4_row, bias)

    # Padded rows produce relu(bias) garbage; slice them off BEFORE reshape.
    return out[0, :B].reshape(B, 1)


def init_v_params(key, dim_observation):
    """Deterministic init matching PyTorch nn.Linear shapes.

    PyTorch Linear(in, out) has weight [out, in]; we store the transpose
    [in, out] so the kernel can use x @ W directly. Biases stored as [1, out].
    """
    sizes = [(dim_observation, 128), (128, 64), (64, 32), (32, 1)]
    params = {}
    for idx, (fan_in, fan_out) in enumerate(sizes, start=1):
        key, kw, kb = jax.random.split(key, 3)
        bound = 1.0 / jnp.sqrt(fan_in)
        params[f"w{idx}"] = jax.random.uniform(
            kw, (fan_in, fan_out), jnp.float32, -bound, bound)
        params[f"b{idx}"] = jax.random.uniform(
            kb, (1, fan_out), jnp.float32, -bound, bound)
    return params


def v_forward_ref(obs, params):
    """Pure-JAX reference (same math as the PyTorch module)."""
    h = jax.nn.relu(obs @ params["w1"] + params["b1"])
    h = jax.nn.relu(h @ params["w2"] + params["b2"])
    h = jax.nn.relu(h @ params["w3"] + params["b3"])
    return h @ params["w4"] + params["b4"]


if __name__ == "__main__":
    dim_observation = 16

    key = jax.random.PRNGKey(0)
    key, k1, k2 = jax.random.split(key, 3)
    params = init_v_params(key, dim_observation)

    # Small, tile-unaligned batch (padding path, single grid step).
    obs_small = jax.random.normal(k1, (37, dim_observation), jnp.float32)
    out_small = jax.block_until_ready(v_forward(obs_small, params))
    ref_small = v_forward_ref(obs_small, params)
    assert out_small.shape == (37, 1)
    assert jnp.allclose(out_small, ref_small, atol=1e-4, rtol=1e-4), "mismatch (small)"

    # Slightly larger batch: exercises the multi-tile / >=2-grid-step path.
    obs_multi = jax.random.normal(k2, (300, dim_observation), jnp.float32)
    out_multi = jax.block_until_ready(v_forward(obs_multi, params))
    ref_multi = v_forward_ref(obs_multi, params)
    assert out_multi.shape == (300, 1)
    assert jnp.allclose(out_multi, ref_multi, atol=1e-4, rtol=1e-4), "mismatch (multi)"

    print("KERNEL_OK")
</pallas_src>

<mosaic_0001>
module attributes {stable_mosaic.version = 11 : i64} {
  func.func @_v_kernel(%arg0: i32, %arg1: memref<256x16xf32, #tpu.memory_space<vmem>>, %arg2: memref<16x128xf32, #tpu.memory_space<vmem>>, %arg3: memref<128x64xf32, #tpu.memory_space<vmem>>, %arg4: memref<64x32xf32, #tpu.memory_space<vmem>>, %arg5: memref<1x32xf32, #tpu.memory_space<vmem>>, %arg6: memref<4x128xf32, #tpu.memory_space<vmem>>, %arg7: memref<1x256xf32, #tpu.memory_space<vmem>>) attributes {dimension_semantics = [#tpu.dimension_semantics<parallel>], iteration_bounds = array<i64: 1>, scalar_prefetch = 0 : i64, scratch_operands = 0 : i64, tpu.core_type = #tpu.core_type<tc>, window_params = [{transform_indices = @transform_0, window_bounds = array<i64: 256, 16>}, {pipeline_mode = #tpu.pipeline_mode<synchronous>, transform_indices = @transform_1, window_bounds = array<i64: 16, 128>}, {pipeline_mode = #tpu.pipeline_mode<synchronous>, transform_indices = @transform_2, window_bounds = array<i64: 128, 64>}, {pipeline_mode = #tpu.pipeline_mode<synchronous>, transform_indices = @transform_3, window_bounds = array<i64: 64, 32>}, {pipeline_mode = #tpu.pipeline_mode<synchronous>, transform_indices = @transform_4, window_bounds = array<i64: 1, 32>}, {pipeline_mode = #tpu.pipeline_mode<synchronous>, transform_indices = @transform_5, window_bounds = array<i64: 4, 128>}, {transform_indices = @transform_6, window_bounds = array<i64: 1, 256>}]} {
    %c0 = arith.constant 0 : index
    %c0_0 = arith.constant 0 : index
    %0 = vector.load %arg6[%c0, %c0_0] : memref<4x128xf32, #tpu.memory_space<vmem>>, vector<4x128xf32>
    %c0_1 = arith.constant 0 : index
    %c0_2 = arith.constant 0 : index
    %1 = vector.load %arg1[%c0_1, %c0_2] : memref<256x16xf32, #tpu.memory_space<vmem>>, vector<256x16xf32>
    %c0_3 = arith.constant 0 : index
    %c0_4 = arith.constant 0 : index
    %2 = vector.load %arg2[%c0_3, %c0_4] : memref<16x128xf32, #tpu.memory_space<vmem>>, vector<16x128xf32>
    %cst = arith.constant dense<0.000000e+00> : vector<256x128xf32>
    %3 = tpu.matmul %1, %2, %cst {dimension_numbers = #tpu.dot_dimension_numbers<[1], [0], [0], [1], [0, 0, 1, 1], [], []>} : vector<256x16xf32>, vector<16x128xf32>, vector<256x128xf32> -> vector<256x128xf32>
    %4 = vector.extract_strided_slice %0 {offsets = [0, 0], sizes = [1, 128], strides = [1, 1]} : vector<4x128xf32> to vector<1x128xf32>
    %5 = vector.broadcast %4 : vector<1x128xf32> to vector<256x128xf32>
    %6 = arith.addf %3, %5 : vector<256x128xf32>
    %cst_5 = arith.constant 0.000000e+00 : f32
    %7 = vector.broadcast %cst_5 : f32 to vector<256x128xf32>
    %8 = arith.maximumf %6, %7 : vector<256x128xf32>
    %c0_6 = arith.constant 0 : index
    %c0_7 = arith.constant 0 : index
    %9 = vector.load %arg3[%c0_6, %c0_7] : memref<128x64xf32, #tpu.memory_space<vmem>>, vector<128x64xf32>
    %cst_8 = arith.constant dense<0.000000e+00> : vector<256x64xf32>
    %10 = tpu.matmul %8, %9, %cst_8 {dimension_numbers = #tpu.dot_dimension_numbers<[1], [0], [0], [1], [0, 0, 1, 1], [], []>} : vector<256x128xf32>, vector<128x64xf32>, vector<256x64xf32> -> vector<256x64xf32>
    %11 = vector.extract_strided_slice %0 {offsets = [1, 0], sizes = [1, 64], strides = [1, 1]} : vector<4x128xf32> to vector<1x64xf32>
    %12 = vector.broadcast %11 : vector<1x64xf32> to vector<256x64xf32>
    %13 = arith.addf %10, %12 : vector<256x64xf32>
    %cst_9 = arith.constant 0.000000e+00 : f32
    %14 = vector.broadcast %cst_9 : f32 to vector<256x64xf32>
    %15 = arith.maximumf %13, %14 : vector<256x64xf32>
    %c0_10 = arith.constant 0 : index
    %c0_11 = arith.constant 0 : index
    %16 = vector.load %arg4[%c0_10, %c0_11] : memref<64x32xf32, #tpu.memory_space<vmem>>, vector<64x32xf32>
    %cst_12 = arith.constant dense<0.000000e+00> : vector<256x32xf32>
    %17 = tpu.matmul %15, %16, %cst_12 {dimension_numbers = #tpu.dot_dimension_numbers<[1], [0], [0], [1], [0, 0, 1, 1], [], []>} : vector<256x64xf32>, vector<64x32xf32>, vector<256x32xf32> -> vector<256x32xf32>
    %18 = vector.extract_strided_slice %0 {offsets = [2, 0], sizes = [1, 32], strides = [1, 1]} : vector<4x128xf32> to vector<1x32xf32>
    %19 = vector.broadcast %18 : vector<1x32xf32> to vector<256x32xf32>
    %20 = arith.addf %17, %19 : vector<256x32xf32>
    %cst_13 = arith.constant 0.000000e+00 : f32
    %21 = vector.broadcast %cst_13 : f32 to vector<256x32xf32>
    %22 = arith.maximumf %20, %21 : vector<256x32xf32>
    %c0_14 = arith.constant 0 : index
    %c0_15 = arith.constant 0 : index
    %23 = vector.load %arg5[%c0_14, %c0_15] : memref<1x32xf32, #tpu.memory_space<vmem>>, vector<1x32xf32>
    %cst_16 = arith.constant dense<0.000000e+00> : vector<1x256xf32>
    %24 = tpu.matmul %23, %22, %cst_16 {dimension_numbers = #tpu.dot_dimension_numbers<[1], [1], [0], [0], [0, 0, 1, 0], [], []>} : vector<1x32xf32>, vector<256x32xf32>, vector<1x256xf32> -> vector<1x256xf32>
    %25 = vector.extract_strided_slice %0 {offsets = [3, 0], sizes = [1, 1], strides = [1, 1]} : vector<4x128xf32> to vector<1x1xf32>
    %26 = vector.broadcast %25 : vector<1x1xf32> to vector<1x256xf32>
    %27 = arith.addf %24, %26 : vector<1x256xf32>
    %c0_17 = arith.constant 0 : index
    %c0_18 = arith.constant 0 : index
    %28 = vector.load %arg7[%c0_17, %c0_18] : memref<1x256xf32, #tpu.memory_space<vmem>>, vector<1x256xf32>
    tpu.vector_store %arg7[%c0_17, %c0_18], %27 {strides = array<i32>} : memref<1x256xf32, #tpu.memory_space<vmem>>, vector<1x256xf32>,
    return
  }
  func.func @transform_0(%arg0: i32) -> (i32, i32) {
    %c0_i32 = arith.constant 0 : i32
    %c0_i32_0 = arith.constant 0 : i32
    return %arg0, %c0_i32 : i32, i32
  }
  func.func @transform_1(%arg0: i32) -> (i32, i32) {
    %c0_i32 = arith.constant 0 : i32
    %c0_i32_0 = arith.constant 0 : i32
    %c0_i32_1 = arith.constant 0 : i32
    return %c0_i32, %c0_i32_0 : i32, i32
  }
  func.func @transform_2(%arg0: i32) -> (i32, i32) {
    %c0_i32 = arith.constant 0 : i32
    %c0_i32_0 = arith.constant 0 : i32
    %c0_i32_1 = arith.constant 0 : i32
    return %c0_i32, %c0_i32_0 : i32, i32
  }
  func.func @transform_3(%arg0: i32) -> (i32, i32) {
    %c0_i32 = arith.constant 0 : i32
    %c0_i32_0 = arith.constant 0 : i32
    %c0_i32_1 = arith.constant 0 : i32
    return %c0_i32, %c0_i32_0 : i32, i32
  }
  func.func @transform_4(%arg0: i32) -> (i32, i32) {
    %c0_i32 = arith.constant 0 : i32
    %c0_i32_0 = arith.constant 0 : i32
    %c0_i32_1 = arith.constant 0 : i32
    return %c0_i32, %c0_i32_0 : i32, i32
  }
  func.func @transform_5(%arg0: i32) -> (i32, i32) {
    %c0_i32 = arith.constant 0 : i32
    %c0_i32_0 = arith.constant 0 : i32
    %c0_i32_1 = arith.constant 0 : i32
    return %c0_i32, %c0_i32_0 : i32, i32
  }
  func.func @transform_6(%arg0: i32) -> (i32, i32) {
    %c0_i32 = arith.constant 0 : i32
    %c0_i32_0 = arith.constant 0 : i32
    return %c0_i32, %arg0 : i32, i32
  }
}

</mosaic_0001>

<bundles_post_ra>
// kernel: v_forward.1
= control target key start
LH: loop header
LB: loop body
LE: loop exit
PB: predicated region body
PF: predicated region fallthrough
CT: control target
= control target key end

     0   :  { %vm62_vm0 = vcmask 130048   ;;  %v58_v56 = vlaneseq  ;;  %vm705_vm1 = vcmask 523264   ;;  %vm1066_vm2 = vcmask 261120   ;;  %s2212_s1 = inlined_call_operand.vmem [shape: f32[16,128], index: 1, kind: input, shape index: {}]   ;;  %s2213_s0 = inlined_call_operand.vmem [shape: f32[256,16], index: 0, kind: input, shape index: {}]   ;;  %s2214_s2 = inlined_call_operand.vmem [shape: f32[128,64], index: 2, kind: input, shape index: {}]   ;;  %s2215_s3 = inlined_call_operand.vmem [shape: f32[64,32], index: 3, kind: input, shape index: {}]   ;;  %s2216_s5 = inlined_call_operand.vmem [shape: f32[4,128], index: 5, kind: input, shape index: {}]   ;;  %s2217_s4 = inlined_call_operand.vmem [shape: f32[1,32], index: 4, kind: input, shape index: {}]   ;;  %s2218_s6 = inlined_call_operand.vmem [shape: f32[1,256], index: 6, kind: output, shape index: {}]  }
   0x1   :  { %v57_v0 = vld [vmem:[%s2212_s1 + $0x8] sm:$0xff]  ;;  %v56_v1 = vld [vmem:[%s2212_s1] sm:$0xff]  ;;  %v26_v4 = vld [vmem:[%s2213_s0 + $0x10] sm:$0xff] }
   0x2   :  { %v24_v2 = vld [vmem:[%s2213_s0] sm:$0xff]  ;;  %1517 = vmatprep.subr.mxu0 %v57_v0  ;;  %v25_v3 = vld [vmem:[%s2213_s0 + $0x8] sm:$0xff]  ;;  %1713 = vmatprep.subr.mxu1 %v57_v0  ;;  %v27_v5 = vld [vmem:[%s2213_s0 + $0x18] sm:$0xff]  ;;  %v1958_v57 = vshrl.u32 %v58_v56, 7  ;;  %vm1257_vm3 = vcmp.lt.s32.totalorder %v58_v56, 256 }
   0x3   :  { %1521 = vmatprep.mubr.msk.f32.mxu0 %vm62_vm0, %v24_v2  ;;  %1518 = vmatpush3.msra.mxu0 %v57_v0  ;;  %v40_v6 = vld [vmem:[%s2213_s0 + $0x80] sm:$0xff]  ;;  %v41_v7 = vld [vmem:[%s2213_s0 + $0x88] sm:$0xff]  ;;  %v42_v8 = vld [vmem:[%s2213_s0 + $0x90] sm:$0xff] }
   0x4   :  { %1519 = vmatprep.subr.mxu0 %v56_v1  ;;  %1715 = vmatpush3.msra.mxu1 %v57_v0  ;;  %v28_v9 = vld [vmem:[%s2213_s0 + $0x20] sm:$0xff]  ;;  %v43_v10 = vld [vmem:[%s2213_s0 + $0x98] sm:$0xff]  ;;  %v29_v11 = vld [vmem:[%s2213_s0 + $0x28] sm:$0xff]  ;;  %v60_v58 = vsub.s32 0, %v1958_v57 }
   0x5   :  { %1520 = vmatpush3.msra.mxu0 %v56_v1  ;;  %1714 = vmatprep.subr.mxu1 %v56_v1  ;;  %v44_v12 = vld [vmem:[%s2213_s0 + $0xa0] sm:$0xff]  ;;  %v30_v13 = vld [vmem:[%s2213_s0 + $0x30] sm:$0xff]  ;;  %v431_v14 = vld [vmem:[%s2214_s2 + $0x78] sm:$0xff] }
   0x6   :  { %1522 = vmatmul.mubr.msk.f32.vlgmr.msra.gmra.mxu0 %vm62_vm0, %v25_v3  ;;  %1716 = vmatpush3.msra.mxu1 %v56_v1  ;;  %v430_v15 = vld [vmem:[%s2214_s2 + $0x70] sm:$0xff]  ;;  %v45_v16 = vld [vmem:[%s2213_s0 + $0xa8] sm:$0xff]  ;;  %v31_v17 = vld [vmem:[%s2213_s0 + $0x38] sm:$0xff] }
   0x7   :  { %1524 = vmatprep.mubr.msk.f32.mxu0 %vm62_vm0, %v26_v4  ;;  %1545 = vmatprep.mubr.msk.f32.mxu1 %vm62_vm0, %v40_v6  ;;  %v46_v18 = vld [vmem:[%s2213_s0 + $0xb0] sm:$0xff]  ;;  %v32_v19 = vld [vmem:[%s2213_s0 + $0x40] sm:$0xff]  ;;  %v429_v20 = vld [vmem:[%s2214_s2 + $0x68] sm:$0xff] }
   0x8   :  { %1546 = vmatmul.mubr.msk.f32.vlgmr.msra.gmra.mxu1 %vm62_vm0, %v41_v7  ;;  %1569 = vmatprep.subr.mxu1 %v431_v14  ;;  %v47_v21 = vld [vmem:[%s2213_s0 + $0xb8] sm:$0xff]  ;;  %v33_v22 = vld [vmem:[%s2213_s0 + $0x48] sm:$0xff]  ;;  %v48_v23 = vld [vmem:[%s2213_s0 + $0xc0] sm:$0xff] }
   0x9   :  { %1548 = vmatprep.mubr.msk.f32.mxu1 %vm62_vm0, %v42_v8  ;;  %1570 = vmatpush3.msra.mxu1 %v431_v14  ;;  %v34_v24 = vld [vmem:[%s2213_s0 + $0x50] sm:$0xff]  ;;  %v428_v25 = vld [vmem:[%s2214_s2 + $0x60] sm:$0xff]  ;;  %v49_v26 = vld [vmem:[%s2213_s0 + $0xc8] sm:$0xff] }
   0xa   :  { %1525 = vmatmul.mubr.msk.f32.gmra.mxu0 %vm62_vm0, %v27_v5  ;;  %1571 = vmatprep.subr.mxu1 %v430_v15  ;;  %v35_v27 = vld [vmem:[%s2213_s0 + $0x58] sm:$0xff]  ;;  %v50_v28 = vld [vmem:[%s2213_s0 + $0xd0] sm:$0xff]  ;;  %v36_v29 = vld [vmem:[%s2213_s0 + $0x60] sm:$0xff] }
   0xb   :  { %1527 = vmatprep.mubr.msk.f32.mxu0 %vm62_vm0, %v28_v9  ;;  %1572 = vmatpush3.msra.mxu1 %v430_v15  ;;  %v427_v30 = vld [vmem:[%s2214_s2 + $0x58] sm:$0xff]  ;;  %v37_v32 = vld [vmem:[%s2213_s0 + $0x68] sm:$0xff]  ;;  %v52_v33 = vld [vmem:[%s2213_s0 + $0xe0] sm:$0xff] }
   0xc   :  { %1549 = vmatmul.mubr.msk.f32.gmra.mxu1 %vm62_vm0, %v43_v10  ;;  %1573 = vmatprep.subr.mxu1 %v429_v20  ;;  %v51_v31 = vld [vmem:[%s2213_s0 + $0xd8] sm:$0xff]  ;;  %v38_v34 = vld [vmem:[%s2213_s0 + $0x70] sm:$0xff]  ;;  %v53_v36 = vld [vmem:[%s2213_s0 + $0xe8] sm:$0xff] }
   0xd   :  { %1551 = vmatprep.mubr.msk.f32.mxu1 %vm62_vm0, %v44_v12  ;;  %1574 = vmatpush3.msra.mxu1 %v429_v20  ;;  %v426_v35 = vld [vmem:[%s2214_s2 + $0x50] sm:$0xff]  ;;  %v39_v37 = vld [vmem:[%s2213_s0 + $0x78] sm:$0xff]  ;;  %v425_v39 = vld [vmem:[%s2214_s2 + $0x48] sm:$0xff] }
   0xe   :  { %1528 = vmatmul.mubr.msk.f32.gmra.mxu0 %vm62_vm0, %v29_v11  ;;  %1575 = vmatprep.subr.mxu1 %v428_v25  ;;  %v54_v38 = vld [vmem:[%s2213_s0 + $0xf0] sm:$0xff]  ;;  %v55_v40 = vld [vmem:[%s2213_s0 + $0xf8] sm:$0xff]  ;;  %v424_v41 = vld [vmem:[%s2214_s2 + $0x40] sm:$0xff] }
   0xf   :  { %1530 = vmatprep.mubr.msk.f32.mxu0 %vm62_vm0, %v30_v13  ;;  %1576 = vmatpush3.msra.mxu1 %v428_v25  ;;  %v423_v42 = vld [vmem:[%s2214_s2 + $0x38] sm:$0xff]  ;;  %v422_v43 = vld [vmem:[%s2214_s2 + $0x30] sm:$0xff]  ;;  %v421_v44 = vld [vmem:[%s2214_s2 + $0x28] sm:$0xff] }
  0x10   :  { %1552 = vmatmul.mubr.msk.f32.gmra.mxu1 %vm62_vm0, %v45_v16  ;;  %1577 = vmatprep.subr.mxu1 %v427_v30  ;;  %v420_v45 = vld [vmem:[%s2214_s2 + $0x20] sm:$0xff]  ;;  %v419_v46 = vld [vmem:[%s2214_s2 + $0x18] sm:$0xff]  ;;  %v418_v47 = vld [vmem:[%s2214_s2 + $0x10] sm:$0xff] }
  0x11   :  { %1554 = vmatprep.mubr.msk.f32.mxu1 %vm62_vm0, %v46_v18  ;;  %1578 = vmatpush3.msra.mxu1 %v427_v30  ;;  %v417_v48 = vld [vmem:[%s2214_s2 + $0x8] sm:$0xff]  ;;  %v416_v49 = vld [vmem:[%s2214_s2] sm:$0xff]  ;;  %v700_v50 = vld [vmem:[%s2215_s3 + $0x38] sm:$0xff] }
  0x12   :  { %1531 = vmatmul.mubr.msk.f32.gmra.mxu0 %vm62_vm0, %v31_v17  ;;  %1579 = vmatprep.subr.mxu1 %v426_v35  ;;  %v699_v51 = vld [vmem:[%s2215_s3 + $0x30] sm:$0xff]  ;;  %v698_v52 = vld [vmem:[%s2215_s3 + $0x28] sm:$0xff]  ;;  %v697_v53 = vld [vmem:[%s2215_s3 + $0x20] sm:$0xff] }
  0x13   :  { %1533 = vmatprep.mubr.msk.f32.mxu0 %vm62_vm0, %v32_v19  ;;  %1580 = vmatpush3.msra.mxu1 %v426_v35  ;;  %v696_v54 = vld [vmem:[%s2215_s3 + $0x18] sm:$0xff]  ;;  %v695_v55 = vld [vmem:[%s2215_s3 + $0x10] sm:$0xff]  ;;  %v1964_v59 = vld [vmem:[%s2216_s5] sm:$0xf] }
  0x14   :  { %1555 = vmatmul.mubr.msk.f32.gmra.mxu1 %vm62_vm0, %v47_v21  ;;  %1581 = vmatprep.subr.mxu1 %v425_v39  ;;  %v1967_v60 = vrot.slane %v1964_v59, %v60_v58 }
  0x15   :  { %1557 = vmatprep.mubr.msk.f32.mxu1 %vm62_vm0, %v48_v23  ;;  %1582 = vmatpush3.msra.mxu1 %v425_v39 }
  0x16   :  { %1534 = vmatmul.mubr.msk.f32.gmra.mxu0 %vm62_vm0, %v33_v22  ;;  %1583 = vmatprep.subr.mxu1 %v424_v41 }
  0x17   :  { %1536 = vmatprep.mubr.msk.f32.mxu0 %vm62_vm0, %v34_v24  ;;  %1584 = vmatpush3.msra.mxu1 %v424_v41 }
  0x18   :  { %1558 = vmatmul.mubr.msk.f32.gmra.mxu1 %vm62_vm0, %v49_v26  ;;  %1585 = vmatprep.subr.mxu1 %v423_v42 }
  0x19   :  { %1560 = vmatprep.mubr.msk.f32.mxu1 %vm62_vm0, %v50_v28  ;;  %1586 = vmatpush3.msra.mxu1 %v423_v42 }
  0x1a   :  { %1537 = vmatmul.mubr.msk.f32.gmra.mxu0 %vm62_vm0, %v35_v27  ;;  %1587 = vmatprep.subr.mxu1 %v422_v43 }
  0x1b   :  { %1539 = vmatprep.mubr.msk.f32.mxu0 %vm62_vm0, %v36_v29  ;;  %1588 = vmatpush3.msra.mxu1 %v422_v43 }
  0x1c   :  { %1561 = vmatmul.mubr.msk.f32.gmra.mxu1 %vm62_vm0, %v51_v31  ;;  %1589 = vmatprep.subr.mxu1 %v421_v44 }
  0x1d   :  { %1563 = vmatprep.mubr.msk.f32.mxu1 %vm62_vm0, %v52_v33  ;;  %1590 = vmatpush3.msra.mxu1 %v421_v44 }
  0x1e   :  { %1540 = vmatmul.mubr.msk.f32.gmra.mxu0 %vm62_vm0, %v37_v32  ;;  %1591 = vmatprep.subr.mxu1 %v420_v45 }
  0x1f   :  { %1542 = vmatprep.mubr.msk.f32.mxu0 %vm62_vm0, %v38_v34  ;;  %1592 = vmatpush3.msra.mxu1 %v420_v45 }
  0x20   :  { %1564 = vmatmul.mubr.msk.f32.gmra.mxu1 %vm62_vm0, %v53_v36  ;;  %1593 = vmatprep.subr.mxu1 %v419_v46 }
  0x21   :  { %1566 = vmatprep.mubr.msk.f32.mxu1 %vm62_vm0, %v54_v38  ;;  %1594 = vmatpush3.msra.mxu1 %v419_v46 }
  0x22   :  { %1543 = vmatmul.mubr.msk.f32.gmra.mxu0 %vm62_vm0, %v39_v37  ;;  %1595 = vmatprep.subr.mxu1 %v418_v47 }
  0x23   :  { %1596 = vmatpush3.msra.mxu1 %v418_v47  ;;  %1649 = vmatprep.subr.mxu0 %v700_v50 }
  0x24   :  { %1567 = vmatmul.mubr.msk.f32.gmra.mxu1 %vm62_vm0, %v55_v40  ;;  %1597 = vmatprep.subr.mxu1 %v417_v48 }
  0x25   :  { %1598 = vmatpush3.msra.mxu1 %v417_v48  ;;  %1650 = vmatpush3.msra.mxu0 %v700_v50 }
  0x26   :  { %1599 = vmatprep.subr.mxu1 %v416_v49  ;;  %1651 = vmatprep.subr.mxu0 %v699_v51 }
  0x27   :  { %1600 = vmatpush3.msra.mxu1 %v416_v49  ;;  %1652 = vmatpush3.msra.mxu0 %v699_v51 }
  0x28   :  { %1653 = vmatprep.subr.mxu0 %v698_v52 }
  0x29   :  { %1654 = vmatpush3.msra.mxu0 %v698_v52 }
  0x2a   :  { %1655 = vmatprep.subr.mxu0 %v697_v53 }
  0x2b   :  { %1656 = vmatpush3.msra.mxu0 %v697_v53 }
  0x2c   :  { %1657 = vmatprep.subr.mxu0 %v696_v54 }
  0x2d   :  { %1658 = vmatpush3.msra.mxu0 %v696_v54 }
  0x2e   :  { %1659 = vmatprep.subr.mxu0 %v695_v55 }
  0x2f   :  { %1660 = vmatpush3.msra.mxu0 %v695_v55 }
  0xc6   :  { %v1523_v61 = vpop.f32.mrf.mxu0 }
  0xc7   :  { %v231_v62 = vadd.f32 %v1523_v61, %v1967_v60 }
  0xc8   :  { %v225_v63 = vpop.f32.mrf.mxu0  ;;  %v1971_v1 = vpop.f32.mrf.mxu1 }
  0xc9   :  { %v226_v0 = vadd.f32 %v225_v63, %v1967_v60  ;;  %v385_v5 = vmax.f32 %v231_v62, 0.0  ;;  %v311_v62 = vadd.f32 %v1971_v1, %v1967_v60 }
  0xca   :  { %v1526_v2 = vpop.f32.mrf.mxu0  ;;  %v305_v4 = vpop.f32.mrf.mxu1 }
  0xcb   :  { %v384_v3 = vmax.f32 %v226_v0, 0.0  ;;  %v241_v6 = vadd.f32 %v1526_v2, %v1967_v60  ;;  %v306_v48 = vadd.f32 %v305_v4, %v1967_v60 }
  0xcc   :  { %v235_v7 = vpop.f32.mrf.mxu0  ;;  %v1975_v9 = vpop.f32.mrf.mxu1 }
  0xcd   :  { %v236_v8 = vadd.f32 %v235_v7, %v1967_v60  ;;  %1601 = vmatprep.mubr.f32.mxu1 %v384_v3  ;;  %v387_v13 = vmax.f32 %v241_v6, 0.0  ;;  %v400_v55 = vmax.f32 %v306_v48, 0.0  ;;  %v401_v3 = vmax.f32 %v311_v62, 0.0 }
  0xce   :  { %v1529_v10 = vpop.f32.mrf.mxu0  ;;  %1602 = vmatmul.mubr.f32.vlgmr.msra.gmra.mxu1 %v385_v5  ;;  %v315_v12 = vpop.f32.mrf.mxu1  ;;  %v321_v4 = vadd.f32 %v1975_v9, %v1967_v60 }
  0xcf   :  { %v386_v11 = vmax.f32 %v236_v8, 0.0  ;;  %v251_v14 = vadd.f32 %v1529_v10, %v1967_v60  ;;  %v316_v58 = vadd.f32 %v315_v12, %v1967_v60 }
  0xd0   :  { %v245_v15 = vpop.f32.mrf.mxu0  ;;  %v1979_v17 = vpop.f32.mrf.mxu1  ;;  %v403_v8 = vmax.f32 %v321_v4, 0.0 }
  0xd1   :  { %v246_v16 = vadd.f32 %v245_v15, %v1967_v60  ;;  %1604 = vmatprep.mubr.f32.mxu1 %v386_v11  ;;  %v389_v20 = vmax.f32 %v251_v14, 0.0  ;;  %v402_v0 = vmax.f32 %v316_v58, 0.0  ;;  %v331_v1 = vadd.f32 %v1979_v17, %v1967_v60 }
  0xd2   :  { %v1532_v18 = vpop.f32.mrf.mxu0  ;;  %1605 = vmatmul.mubr.f32.gmra.mxu1 %v387_v13  ;;  %v325_v23 = vpop.f32.mrf.mxu1 }
  0xd3   :  { %v388_v19 = vmax.f32 %v246_v16, 0.0  ;;  %v261_v21 = vadd.f32 %v1532_v18, %v1967_v60  ;;  %v326_v2 = vadd.f32 %v325_v23, %v1967_v60  ;;  %v405_v13 = vmax.f32 %v331_v1, 0.0 }
  0xd4   :  { %v255_v22 = vpop.f32.mrf.mxu0  ;;  %v1556_v30 = vpop.f32.mrf.mxu1 }
  0xd5   :  { %v256_v24 = vadd.f32 %v255_v22, %v1967_v60  ;;  %1607 = vmatprep.mubr.f32.mxu1 %v388_v19  ;;  %v391_v27 = vmax.f32 %v261_v21, 0.0  ;;  %v404_v6 = vmax.f32 %v326_v2, 0.0  ;;  %v341_v14 = vadd.f32 %v1556_v30, %v1967_v60 }
  0xd6   :  { %v1535_v25 = vpop.f32.mrf.mxu0  ;;  %1608 = vmatmul.mubr.f32.gmra.mxu1 %v389_v20  ;;  %v335_v37 = vpop.f32.mrf.mxu1 }
  0xd7   :  { %v390_v26 = vmax.f32 %v256_v24, 0.0  ;;  %v271_v28 = vadd.f32 %v1535_v25, %v1967_v60  ;;  %v336_v7 = vadd.f32 %v335_v37, %v1967_v60  ;;  %v407_v18 = vmax.f32 %v341_v14, 0.0 }
  0xd8   :  { %v265_v29 = vpop.f32.mrf.mxu0  ;;  %v1559_v44 = vpop.f32.mrf.mxu1 }
  0xd9   :  { %v266_v31 = vadd.f32 %v265_v29, %v1967_v60  ;;  %1610 = vmatprep.mubr.f32.mxu1 %v390_v26  ;;  %v393_v34 = vmax.f32 %v271_v28, 0.0  ;;  %v406_v11 = vmax.f32 %v336_v7, 0.0  ;;  %v351_v19 = vadd.f32 %v1559_v44, %v1967_v60 }
  0xda   :  { %v1538_v32 = vpop.f32.mrf.mxu0  ;;  %1611 = vmatmul.mubr.f32.gmra.mxu1 %v391_v27  ;;  %v345_v52 = vpop.f32.mrf.mxu1 }
  0xdb   :  { %v392_v33 = vmax.f32 %v266_v31, 0.0  ;;  %v281_v35 = vadd.f32 %v1538_v32, %v1967_v60  ;;  %v346_v12 = vadd.f32 %v345_v52, %v1967_v60  ;;  %v409_v22 = vmax.f32 %v351_v19, 0.0 }
  0xdc   :  { %v275_v36 = vpop.f32.mrf.mxu0  ;;  %v1562_v63 = vpop.f32.mrf.mxu1 }
  0xdd   :  { %v276_v38 = vadd.f32 %v275_v36, %v1967_v60  ;;  %1613 = vmatprep.mubr.f32.mxu1 %v392_v33  ;;  %v395_v41 = vmax.f32 %v281_v35, 0.0  ;;  %v408_v15 = vmax.f32 %v346_v12, 0.0  ;;  %v361_v23 = vadd.f32 %v1562_v63, %v1967_v60  ;;  %v694_v33 = vld [vmem:[%s2215_s3 + $0x8] sm:$0xff] }
  0xde   :  { %v1541_v39 = vpop.f32.mrf.mxu0  ;;  %1614 = vmatmul.mubr.f32.gmra.mxu1 %v393_v34  ;;  %v355_v5 = vpop.f32.mrf.mxu1  ;;  %1661 = vmatprep.subr.mxu0 %v694_v33  ;;  %v693_v34 = vld [vmem:[%s2215_s3] sm:$0xff]  ;;  %v434_v35 = vsub.s32 1, %v1958_v57 }
  0xdf   :  { %v394_v40 = vmax.f32 %v276_v38, 0.0  ;;  %v291_v42 = vadd.f32 %v1541_v39, %v1967_v60  ;;  %v356_v16 = vadd.f32 %v355_v5, %v1967_v60  ;;  %v411_v27 = vmax.f32 %v361_v23, 0.0  ;;  %1662 = vmatpush3.msra.mxu0 %v694_v33 }
  0xe0   :  { %v285_v43 = vpop.f32.mrf.mxu0  ;;  %v1565_v10 = vpop.f32.mrf.mxu1  ;;  %1663 = vmatprep.subr.mxu0 %v693_v34 }
  0xe1   :  { %v286_v45 = vadd.f32 %v285_v43, %v1967_v60  ;;  %1616 = vmatprep.mubr.f32.mxu1 %v394_v40  ;;  %v397_v49 = vmax.f32 %v291_v42, 0.0  ;;  %v410_v17 = vmax.f32 %v356_v16, 0.0  ;;  %v371_v28 = vadd.f32 %v1565_v10, %v1967_v60  ;;  %1664 = vmatpush3.msra.mxu0 %v693_v34 }
  0xe2   :  { %v1544_v46 = vpop.f32.mrf.mxu0  ;;  %1617 = vmatmul.mubr.f32.gmra.mxu1 %v395_v41  ;;  %v365_v9 = vpop.f32.mrf.mxu1 }
  0xe3   :  { %v396_v47 = vmax.f32 %v286_v45, 0.0  ;;  %v301_v50 = vadd.f32 %v1544_v46, %v1967_v60  ;;  %v366_v21 = vadd.f32 %v365_v9, %v1967_v60  ;;  %v413_v30 = vmax.f32 %v371_v28, 0.0 }
  0xe4   :  { %v295_v51 = vpop.f32.mrf.mxu0  ;;  %v1568_v20 = vpop.f32.mrf.mxu1 }
  0xe5   :  { %v296_v53 = vadd.f32 %v295_v51, %v1967_v60  ;;  %1619 = vmatprep.mubr.f32.mxu1 %v396_v47  ;;  %v399_v61 = vmax.f32 %v301_v50, 0.0  ;;  %v412_v25 = vmax.f32 %v366_v21, 0.0  ;;  %v381_v31 = vadd.f32 %v1568_v20, %v1967_v60 }
  0xe6   :  { %1620 = vmatmul.mubr.f32.gmra.mxu1 %v397_v49  ;;  %v375_v24 = vpop.f32.mrf.mxu1 }
  0xe7   :  { %v398_v54 = vmax.f32 %v296_v53, 0.0  ;;  %v376_v26 = vadd.f32 %v375_v24, %v1967_v60  ;;  %v415_v32 = vmax.f32 %v381_v31, 0.0  ;;  %v2018_v60 = vrot.slane %v1964_v59, %v434_v35 }
  0xe9   :  { %1622 = vmatprep.mubr.f32.mxu1 %v398_v54  ;;  %v414_v29 = vmax.f32 %v376_v26, 0.0 }
  0xea   :  { %1623 = vmatmul.mubr.f32.gmra.mxu1 %v399_v61 }
  0xeb   :  { %1625 = vmatprep.mubr.f32.mxu1 %v400_v55 }
  0xee   :  { %1626 = vmatmul.mubr.f32.gmra.mxu1 %v401_v3 }
  0xef   :  { %1628 = vmatprep.mubr.f32.mxu1 %v402_v0 }
  0xf2   :  { %1629 = vmatmul.mubr.f32.gmra.mxu1 %v403_v8 }
  0xf3   :  { %1631 = vmatprep.mubr.f32.mxu1 %v404_v6 }
  0xf6   :  { %1632 = vmatmul.mubr.f32.gmra.mxu1 %v405_v13 }
  0xf7   :  { %1634 = vmatprep.mubr.f32.mxu1 %v406_v11 }
  0xfa   :  { %1635 = vmatmul.mubr.f32.gmra.mxu1 %v407_v18 }
  0xfb   :  { %1637 = vmatprep.mubr.f32.mxu1 %v408_v15 }
  0xfe   :  { %1638 = vmatmul.mubr.f32.gmra.mxu1 %v409_v22 }
  0xff   :  { %1640 = vmatprep.mubr.f32.mxu1 %v410_v17 }
 0x102   :  { %1641 = vmatmul.mubr.f32.gmra.mxu1 %v411_v27 }
 0x103   :  { %1643 = vmatprep.mubr.f32.mxu1 %v412_v25 }
 0x106   :  { %1644 = vmatmul.mubr.f32.gmra.mxu1 %v413_v30 }
 0x107   :  { %1646 = vmatprep.mubr.f32.mxu1 %v414_v29 }
 0x10a   :  { %1647 = vmatmul.mubr.f32.gmra.mxu1 %v415_v32 }
 0x18e   :  { %v1603_v36 = vpop.f32.mrf.mxu1 }
 0x18f   :  { %v508_v37 = vadd.f32 %v1603_v36, %v2018_v60 }
 0x190   :  { %v502_v38 = vpop.f32.mrf.mxu1 }
 0x191   :  { %v503_v39 = vadd.f32 %v502_v38, %v2018_v60  ;;  %v662_v42 = vmax.f32 %v508_v37, 0.0 }
 0x192   :  { %v1606_v40 = vpop.f32.mrf.mxu1 }
 0x193   :  { %v661_v41 = vmax.f32 %v503_v39, 0.0  ;;  %v518_v43 = vadd.f32 %v1606_v40, %v2018_v60 }
 0x194   :  { %v512_v44 = vpop.f32.mrf.mxu1 }
 0x195   :  { %v513_v45 = vadd.f32 %v512_v44, %v2018_v60  ;;  %1665 = vmatprep.mubr.msk.f32.mxu0 %vm705_vm1, %v661_v41  ;;  %v664_v48 = vmax.f32 %v518_v43, 0.0 }
 0x196   :  { %v1609_v46 = vpop.f32.mrf.mxu1  ;;  %1666 = vmatmul.mubr.msk.f32.vlgmr.msra.gmra.mxu0 %vm705_vm1, %v662_v42 }
 0x197   :  { %v663_v47 = vmax.f32 %v513_v45, 0.0  ;;  %v528_v49 = vadd.f32 %v1609_v46, %v2018_v60 }
 0x198   :  { %v522_v50 = vpop.f32.mrf.mxu1 }
 0x199   :  { %v523_v51 = vadd.f32 %v522_v50, %v2018_v60  ;;  %1668 = vmatprep.mubr.msk.f32.mxu0 %vm705_vm1, %v663_v47  ;;  %v666_v54 = vmax.f32 %v528_v49, 0.0 }
 0x19a   :  { %v1612_v52 = vpop.f32.mrf.mxu1  ;;  %1669 = vmatmul.mubr.msk.f32.gmra.mxu0 %vm705_vm1, %v664_v48 }
 0x19b   :  { %v665_v53 = vmax.f32 %v523_v51, 0.0  ;;  %v538_v55 = vadd.f32 %v1612_v52, %v2018_v60 }
 0x19c   :  { %v532_v58 = vpop.f32.mrf.mxu1 }
 0x19d   :  { %v533_v61 = vadd.f32 %v532_v58, %v2018_v60  ;;  %1671 = vmatprep.mubr.msk.f32.mxu0 %vm705_vm1, %v665_v53  ;;  %v668_v0 = vmax.f32 %v538_v55, 0.0 }
 0x19e   :  { %v1615_v62 = vpop.f32.mrf.mxu1  ;;  %1672 = vmatmul.mubr.msk.f32.gmra.mxu0 %vm705_vm1, %v666_v54 }
 0x19f   :  { %v667_v63 = vmax.f32 %v533_v61, 0.0  ;;  %v548_v2 = vadd.f32 %v1615_v62, %v2018_v60 }
 0x1a0   :  { %v542_v3 = vpop.f32.mrf.mxu1 }
 0x1a1   :  { %v543_v4 = vadd.f32 %v542_v3, %v2018_v60  ;;  %1674 = vmatprep.mubr.msk.f32.mxu0 %vm705_vm1, %v667_v63  ;;  %v670_v7 = vmax.f32 %v548_v2, 0.0 }
 0x1a2   :  { %v1618_v5 = vpop.f32.mrf.mxu1  ;;  %1675 = vmatmul.mubr.msk.f32.gmra.mxu0 %vm705_vm1, %v668_v0 }
 0x1a3   :  { %v669_v6 = vmax.f32 %v543_v4, 0.0  ;;  %v558_v8 = vadd.f32 %v1618_v5, %v2018_v60 }
 0x1a4   :  { %v552_v1 = vpop.f32.mrf.mxu1 }
 0x1a5   :  { %v553_v10 = vadd.f32 %v552_v1, %v2018_v60  ;;  %1677 = vmatprep.mubr.msk.f32.mxu0 %vm705_vm1, %v669_v6  ;;  %v672_v13 = vmax.f32 %v558_v8, 0.0 }
 0x1a6   :  { %v1621_v11 = vpop.f32.mrf.mxu1  ;;  %1678 = vmatmul.mubr.msk.f32.gmra.mxu0 %vm705_vm1, %v670_v7 }
 0x1a7   :  { %v671_v12 = vmax.f32 %v553_v10, 0.0  ;;  %v568_v14 = vadd.f32 %v1621_v11, %v2018_v60 }
 0x1a8   :  { %v562_v9 = vpop.f32.mrf.mxu1 }
 0x1a9   :  { %v563_v15 = vadd.f32 %v562_v9, %v2018_v60  ;;  %1680 = vmatprep.mubr.msk.f32.mxu0 %vm705_vm1, %v671_v12  ;;  %v674_v19 = vmax.f32 %v568_v14, 0.0  ;;  %v1720_v9 = vmov 0  }
 0x1aa   :  { %v1624_v16 = vpop.f32.mrf.mxu1  ;;  %1681 = vmatmul.mubr.msk.f32.gmra.mxu0 %vm705_vm1, %v672_v13  ;;  %v2087_v13 = vld [vmem:[%s2217_s4] sm:$0x1]  ;;  %1719 = vset.pattern.permute.xlu0 %v1720_v9 }
 0x1ab   :  { %v673_v18 = vmax.f32 %v563_v15, 0.0  ;;  %v578_v20 = vadd.f32 %v1624_v16, %v2018_v60  ;;  %1515 = vmatprep.mubr.msk.f32.mxu1 %vm1066_vm2, %v2087_v13  ;;  %1062 = vperm.xlu0 %1719, %v1964_v59  }
 0x1ac   :  { %v572_v17 = vpop.f32.mrf.mxu1 }
 0x1ad   :  { %v573_v21 = vadd.f32 %v572_v17, %v2018_v60  ;;  %1683 = vmatprep.mubr.msk.f32.mxu0 %vm705_vm1, %v673_v18  ;;  %v676_v24 = vmax.f32 %v578_v20, 0.0 }
 0x1ae   :  { %v1627_v22 = vpop.f32.mrf.mxu1  ;;  %1684 = vmatmul.mubr.msk.f32.gmra.mxu0 %vm705_vm1, %v674_v19 }
 0x1af   :  { %v675_v23 = vmax.f32 %v573_v21, 0.0  ;;  %v588_v25 = vadd.f32 %v1627_v22, %v2018_v60 }
 0x1b0   :  { %v582_v26 = vpop.f32.mrf.mxu1 }
 0x1b1   :  { %v583_v27 = vadd.f32 %v582_v26, %v2018_v60  ;;  %1686 = vmatprep.mubr.msk.f32.mxu0 %vm705_vm1, %v675_v23  ;;  %v678_v30 = vmax.f32 %v588_v25, 0.0 }
 0x1b2   :  { %v1630_v28 = vpop.f32.mrf.mxu1  ;;  %1687 = vmatmul.mubr.msk.f32.gmra.mxu0 %vm705_vm1, %v676_v24 }
 0x1b3   :  { %v677_v29 = vmax.f32 %v583_v27, 0.0  ;;  %v598_v31 = vadd.f32 %v1630_v28, %v2018_v60 }
 0x1b4   :  { %v592_v32 = vpop.f32.mrf.mxu1 }
 0x1b5   :  { %v593_v33 = vadd.f32 %v592_v32, %v2018_v60  ;;  %1689 = vmatprep.mubr.msk.f32.mxu0 %vm705_vm1, %v677_v29  ;;  %v680_v36 = vmax.f32 %v598_v31, 0.0 }
 0x1b6   :  { %v1633_v34 = vpop.f32.mrf.mxu1  ;;  %1690 = vmatmul.mubr.msk.f32.gmra.mxu0 %vm705_vm1, %v678_v30 }
 0x1b7   :  { %v679_v35 = vmax.f32 %v593_v33, 0.0  ;;  %v608_v37 = vadd.f32 %v1633_v34, %v2018_v60 }
 0x1b8   :  { %v602_v38 = vpop.f32.mrf.mxu1 }
 0x1b9   :  { %v603_v39 = vadd.f32 %v602_v38, %v2018_v60  ;;  %1692 = vmatprep.mubr.msk.f32.mxu0 %vm705_vm1, %v679_v35  ;;  %v682_v42 = vmax.f32 %v608_v37, 0.0 }
 0x1ba   :  { %v1636_v40 = vpop.f32.mrf.mxu1  ;;  %1693 = vmatmul.mubr.msk.f32.gmra.mxu0 %vm705_vm1, %v680_v36 }
 0x1bb   :  { %v681_v41 = vmax.f32 %v603_v39, 0.0  ;;  %v618_v43 = vadd.f32 %v1636_v40, %v2018_v60  ;;  %v703_v40 = vsub.s32 2, %v1958_v57 }
 0x1bc   :  { %v612_v44 = vpop.f32.mrf.mxu1 }
 0x1bd   :  { %v613_v45 = vadd.f32 %v612_v44, %v2018_v60  ;;  %1695 = vmatprep.mubr.msk.f32.mxu0 %vm705_vm1, %v681_v41  ;;  %v684_v48 = vmax.f32 %v618_v43, 0.0  ;;  %v2124_v43 = vrot.slane %v1964_v59, %v703_v40 }
 0x1be   :  { %v1639_v46 = vpop.f32.mrf.mxu1  ;;  %1696 = vmatmul.mubr.msk.f32.gmra.mxu0 %vm705_vm1, %v682_v42 }
 0x1bf   :  { %v683_v47 = vmax.f32 %v613_v45, 0.0  ;;  %v628_v49 = vadd.f32 %v1639_v46, %v2018_v60 }
 0x1c0   :  { %v622_v50 = vpop.f32.mrf.mxu1 }
 0x1c1   :  { %v623_v51 = vadd.f32 %v622_v50, %v2018_v60  ;;  %1698 = vmatprep.mubr.msk.f32.mxu0 %vm705_vm1, %v683_v47  ;;  %v686_v54 = vmax.f32 %v628_v49, 0.0 }
 0x1c2   :  { %v1642_v52 = vpop.f32.mrf.mxu1  ;;  %1699 = vmatmul.mubr.msk.f32.gmra.mxu0 %vm705_vm1, %v684_v48 }
 0x1c3   :  { %v685_v53 = vmax.f32 %v623_v51, 0.0  ;;  %v638_v55 = vadd.f32 %v1642_v52, %v2018_v60 }
 0x1c4   :  { %v632_v58 = vpop.f32.mrf.mxu1 }
 0x1c5   :  { %v633_v61 = vadd.f32 %v632_v58, %v2018_v60  ;;  %1701 = vmatprep.mubr.msk.f32.mxu0 %vm705_vm1, %v685_v53  ;;  %v688_v0 = vmax.f32 %v638_v55, 0.0 }
 0x1c6   :  { %v1645_v62 = vpop.f32.mrf.mxu1  ;;  %1702 = vmatmul.mubr.msk.f32.gmra.mxu0 %vm705_vm1, %v686_v54 }
 0x1c7   :  { %v687_v63 = vmax.f32 %v633_v61, 0.0  ;;  %v648_v2 = vadd.f32 %v1645_v62, %v2018_v60 }
 0x1c8   :  { %v642_v3 = vpop.f32.mrf.mxu1 }
 0x1c9   :  { %v643_v4 = vadd.f32 %v642_v3, %v2018_v60  ;;  %1704 = vmatprep.mubr.msk.f32.mxu0 %vm705_vm1, %v687_v63  ;;  %v690_v7 = vmax.f32 %v648_v2, 0.0 }
 0x1ca   :  { %v1648_v5 = vpop.f32.mrf.mxu1  ;;  %1705 = vmatmul.mubr.msk.f32.gmra.mxu0 %vm705_vm1, %v688_v0 }
 0x1cb   :  { %v689_v6 = vmax.f32 %v643_v4, 0.0  ;;  %v658_v8 = vadd.f32 %v1648_v5, %v2018_v60 }
 0x1cc   :  { %v652_v1 = vpop.f32.mrf.mxu1 }
 0x1cd   :  { %v653_v10 = vadd.f32 %v652_v1, %v2018_v60  ;;  %1707 = vmatprep.mubr.msk.f32.mxu0 %vm705_vm1, %v689_v6  ;;  %v692_v12 = vmax.f32 %v658_v8, 0.0 }
 0x1ce   :  { %1708 = vmatmul.mubr.msk.f32.gmra.mxu0 %vm705_vm1, %v690_v7 }
 0x1cf   :  { %v691_v11 = vmax.f32 %v653_v10, 0.0 }
 0x1d1   :  { %1710 = vmatprep.mubr.msk.f32.mxu0 %vm705_vm1, %v691_v11 }
 0x1d2   :  { %1711 = vmatmul.mubr.msk.f32.gmra.mxu0 %vm705_vm1, %v692_v12 }
 0x256   :  { %v2089_v14 = vpop.f32.mrf.mxu0 }
 0x258   :  { %v2093_v60 = vpop.f32.mrf.mxu0 }
 0x25a   :  { %v2096_v15 = vpop.f32.mrf.mxu0 }
 0x25c   :  { %v2098_v16 = vpop.f32.mrf.mxu0 }
 0x25e   :  { %v2100_v18 = vpop.f32.mrf.mxu0 }
 0x260   :  { %v2102_v19 = vpop.f32.mrf.mxu0 }
 0x262   :  { %v2104_v20 = vpop.f32.mrf.mxu0 }
 0x264   :  { %v2106_v17 = vpop.f32.mrf.mxu0 }
 0x266   :  { %v1679_v21 = vpop.f32.mrf.mxu0 }
 0x267   :  { %v914_v11 = vadd.f32 %v1679_v21, %v2124_v43  ;;  %v904_v21 = vadd.f32 %v2104_v20, %v2124_v43  ;;  %v894_v20 = vadd.f32 %v2100_v18, %v2124_v43  ;;  %v884_v18 = vadd.f32 %v2096_v15, %v2124_v43 }
 0x268   :  { %v2108_v22 = vpop.f32.mrf.mxu0  ;;  %v874_v15 = vadd.f32 %v2089_v14, %v2124_v43  ;;  %v1721_v14 = vmov 1966171168  }
 0x26a   :  { %v1682_v23 = vpop.f32.mrf.mxu0 }
 0x26b   :  { %v924_v3 = vadd.f32 %v1682_v23, %v2124_v43 }
 0x26c   :  { %v918_v24 = vpop.f32.mrf.mxu0 }
 0x26d   :  { %v1038_v7 = vmax.f32 %v924_v3, 0.0  ;;  %v919_v8 = vadd.f32 %v918_v24, %v2124_v43  ;;  %v909_v24 = vadd.f32 %v2108_v22, %v2124_v43  ;;  %v899_v22 = vadd.f32 %v2106_v17, %v2124_v43 }
 0x26e   :  { %v1685_v25 = vpop.f32.mrf.mxu0  ;;  %v1032_v17 = vmax.f32 %v894_v20, 0.0 }
 0x26f   :  { %v934_v59 = vadd.f32 %v1685_v25, %v2124_v43  ;;  %v1037_v12 = vmax.f32 %v919_v8, 0.0  ;;  %v1036_v25 = vmax.f32 %v914_v11, 0.0 }
 0x270   :  { %v928_v26 = vpop.f32.mrf.mxu0 }
 0x271   :  { %v1040_v62 = vmax.f32 %v934_v59, 0.0  ;;  %v929_v63 = vadd.f32 %v928_v26, %v2124_v43 }
 0x272   :  { %v1688_v27 = vpop.f32.mrf.mxu0 }
 0x273   :  { %v944_v45 = vadd.f32 %v1688_v27, %v2124_v43  ;;  %v1039_v4 = vmax.f32 %v929_v63, 0.0 }
 0x274   :  { %v938_v28 = vpop.f32.mrf.mxu0 }
 0x275   :  { %v1042_v51 = vmax.f32 %v944_v45, 0.0  ;;  %v939_v52 = vadd.f32 %v938_v28, %v2124_v43  ;;  %v1035_v28 = vmax.f32 %v909_v24, 0.0 }
 0x276   :  { %v2110_v29 = vpop.f32.mrf.mxu0 }
 0x277   :  { %v1041_v55 = vmax.f32 %v939_v52, 0.0 }
 0x278   :  { %v2112_v30 = vpop.f32.mrf.mxu0 }
 0x27a   :  { %v2114_v31 = vpop.f32.mrf.mxu0 }
 0x27c   :  { %v2116_v32 = vpop.f32.mrf.mxu0 }
 0x27e   :  { %v2118_v33 = vpop.f32.mrf.mxu0 }
 0x280   :  { %v2120_v34 = vpop.f32.mrf.mxu0 }
 0x282   :  { %v1700_v35 = vpop.f32.mrf.mxu0 }
 0x283   :  { %v984_v26 = vadd.f32 %v1700_v35, %v2124_v43  ;;  %v974_v35 = vadd.f32 %v2118_v33, %v2124_v43  ;;  %v889_v33 = vadd.f32 %v2102_v19, %v2124_v43  ;;  %v1030_v19 = vmax.f32 %v884_v18, 0.0 }
 0x284   :  { %v978_v36 = vpop.f32.mrf.mxu0 }
 0x286   :  { %v1703_v37 = vpop.f32.mrf.mxu0 }
 0x287   :  { %v994_v1 = vadd.f32 %v1703_v37, %v2124_v43  ;;  %v1050_v37 = vmax.f32 %v984_v26, 0.0 }
 0x288   :  { %v988_v38 = vpop.f32.mrf.mxu0 }
 0x289   :  { %v1052_v9 = vmax.f32 %v994_v1, 0.0  ;;  %v989_v23 = vadd.f32 %v988_v38, %v2124_v43  ;;  %v979_v38 = vadd.f32 %v978_v36, %v2124_v43  ;;  %v1033_v36 = vmax.f32 %v899_v22, 0.0 }
 0x28a   :  { %v1706_v39 = vpop.f32.mrf.mxu0 }
 0x28b   :  { %v1004_v0 = vadd.f32 %v1706_v39, %v2124_v43  ;;  %v1051_v27 = vmax.f32 %v989_v23, 0.0  ;;  %v1034_v39 = vmax.f32 %v904_v21, 0.0  ;;  %v1049_v40 = vmax.f32 %v979_v38, 0.0 }
 0x28c   :  { %v998_v41 = vpop.f32.mrf.mxu0 }
 0x28d   :  { %v1054_v5 = vmax.f32 %v1004_v0, 0.0  ;;  %v999_v6 = vadd.f32 %v998_v41, %v2124_v43  ;;  %v1048_v41 = vmax.f32 %v974_v35, 0.0 }
 0x28e   :  { %v1709_v42 = vpop.f32.mrf.mxu0 }
 0x28f   :  { %v1014_v53 = vadd.f32 %v1709_v42, %v2124_v43  ;;  %v1053_v10 = vmax.f32 %v999_v6, 0.0  ;;  %v969_v42 = vadd.f32 %v2120_v34, %v2124_v43  ;;  %v1031_v34 = vmax.f32 %v889_v33, 0.0 }
 0x290   :  { %v1008_v44 = vpop.f32.mrf.mxu0 }
 0x291   :  { %v1056_v58 = vmax.f32 %v1014_v53, 0.0  ;;  %v1009_v61 = vadd.f32 %v1008_v44, %v2124_v43  ;;  %v964_v44 = vadd.f32 %v2114_v31, %v2124_v43  ;;  %v1047_v45 = vmax.f32 %v969_v42, 0.0 }
 0x292   :  { %v1712_v46 = vpop.f32.mrf.mxu0  ;;  %v879_v31 = vadd.f32 %v2098_v16, %v2124_v43  ;;  %v1028_v16 = vmax.f32 %v874_v15, 0.0 }
 0x293   :  { %v1024_v47 = vadd.f32 %v1712_v46, %v2124_v43  ;;  %v1055_v2 = vmax.f32 %v1009_v61, 0.0  ;;  %v1046_v46 = vmax.f32 %v964_v44, 0.0 }
 0x294   :  { %v1018_v48 = vpop.f32.mrf.mxu0 }
 0x295   :  { %v1058_v49 = vmax.f32 %v1024_v47, 0.0  ;;  %v1019_v50 = vadd.f32 %v1018_v48, %v2124_v43  ;;  %v959_v47 = vadd.f32 %v2116_v32, %v2124_v43  ;;  %v954_v48 = vadd.f32 %v2110_v29, %v2124_v43 }
 0x296   :  { %v1029_v32 = vmax.f32 %v879_v31, 0.0  ;;  %v869_v29 = vadd.f32 %v2093_v60, %v2124_v43 }
 0x297   :  { %v1057_v54 = vmax.f32 %v1019_v50, 0.0  ;;  %1483 = vmatprep.subr.msk.mxu1 %vm1066_vm2, %v1058_v49  ;;  %v1045_v49 = vmax.f32 %v959_v47, 0.0  ;;  %v1044_v50 = vmax.f32 %v954_v48, 0.0 }
 0x298   :  { %1484 = vmatpush3.xpose.msk.msra.mxu1 %vm1066_vm2, %v1042_v51  ;;  %v949_v51 = vadd.f32 %v2112_v30, %v2124_v43  ;;  %v1027_v53 = vmax.f32 %v869_v29, 0.0  ;;  %v1241_v30 = vunpack.c.l.s4 %v1721_v14 }
 0x299   :  { %1485 = vmatprep.subr.msk.mxu1 %vm1066_vm2, %v1057_v54  ;;  %v1063_v54 = vpop.permute.xlu0 %1062 }
 0x29a   :  { %v1043_v52 = vmax.f32 %v949_v51, 0.0  ;;  %v1064_v59 = vrot.slane %v1063_v54, 3 }
 0x29c   :  { %1486 = vmatpush3.xpose.msk.msra.mxu1 %vm1066_vm2, %v1041_v55  ;;  %v1242_v55 = vunpack.c.0.s8 %v1241_v30 }
 0x29d   :  { %1487 = vmatprep.subr.msk.mxu1 %vm1066_vm2, %v1056_v58 }
 0x29e   :  { %v1245_v43 = vsub.s32 %v1242_v55, %v1958_v57 }
 0x2a0   :  { %1488 = vmatpush3.xpose.msk.msra.mxu1 %vm1066_vm2, %v1040_v62 }
 0x2a1   :  { %1489 = vmatprep.subr.msk.mxu1 %vm1066_vm2, %v1055_v2 }
 0x2a4   :  { %1490 = vmatpush3.xpose.msk.msra.mxu1 %vm1066_vm2, %v1039_v4 }
 0x2a5   :  { %1491 = vmatprep.subr.msk.mxu1 %vm1066_vm2, %v1054_v5 }
 0x2a8   :  { %1492 = vmatpush3.xpose.msk.msra.mxu1 %vm1066_vm2, %v1038_v7 }
 0x2a9   :  { %1493 = vmatprep.subr.msk.mxu1 %vm1066_vm2, %v1053_v10 }
 0x2ac   :  { %1494 = vmatpush3.xpose.msk.msra.mxu1 %vm1066_vm2, %v1037_v12 }
 0x2ad   :  { %1495 = vmatprep.subr.msk.mxu1 %vm1066_vm2, %v1052_v9 }
 0x2b0   :  { %1496 = vmatpush3.xpose.msk.msra.mxu1 %vm1066_vm2, %v1036_v25 }
 0x2b1   :  { %1497 = vmatprep.subr.msk.mxu1 %vm1066_vm2, %v1051_v27 }
 0x2b4   :  { %1498 = vmatpush3.xpose.msk.msra.mxu1 %vm1066_vm2, %v1035_v28 }
 0x2b5   :  { %1499 = vmatprep.subr.msk.mxu1 %vm1066_vm2, %v1050_v37 }
 0x2b8   :  { %1500 = vmatpush3.xpose.msk.msra.mxu1 %vm1066_vm2, %v1034_v39 }
 0x2b9   :  { %1501 = vmatprep.subr.msk.mxu1 %vm1066_vm2, %v1049_v40 }
 0x2bc   :  { %1502 = vmatpush3.xpose.msk.msra.mxu1 %vm1066_vm2, %v1033_v36 }
 0x2bd   :  { %1503 = vmatprep.subr.msk.mxu1 %vm1066_vm2, %v1048_v41 }
 0x2c0   :  { %1504 = vmatpush3.xpose.msk.msra.mxu1 %vm1066_vm2, %v1032_v17 }
 0x2c1   :  { %1505 = vmatprep.subr.msk.mxu1 %vm1066_vm2, %v1047_v45 }
 0x2c4   :  { %1506 = vmatpush3.xpose.msk.msra.mxu1 %vm1066_vm2, %v1031_v34 }
 0x2c5   :  { %1507 = vmatprep.subr.msk.mxu1 %vm1066_vm2, %v1046_v46 }
 0x2c8   :  { %1508 = vmatpush3.xpose.msk.msra.mxu1 %vm1066_vm2, %v1030_v19 }
 0x2c9   :  { %1509 = vmatprep.subr.msk.mxu1 %vm1066_vm2, %v1045_v49 }
 0x2cc   :  { %1510 = vmatpush3.xpose.msk.msra.mxu1 %vm1066_vm2, %v1029_v32 }
 0x2cd   :  { %1511 = vmatprep.subr.msk.mxu1 %vm1066_vm2, %v1044_v50 }
 0x2d0   :  { %1512 = vmatpush3.xpose.msk.msra.mxu1 %vm1066_vm2, %v1028_v16 }
 0x2d1   :  { %1513 = vmatprep.subr.msk.mxu1 %vm1066_vm2, %v1043_v52 }
 0x2d4   :  { %1514 = vmatpush3.xpose.msk.msra.mxu1 %vm1066_vm2, %v1027_v53 }
 0x2d7   :  { %1516 = vmatmul.mubr.msk.f32.vlgmr.msra.gmra.mxu1 %vm1066_vm2, %v2087_v13 }
 0x397   :  { %v1232_v58 = vpop.f32.mrf.mxu1 }
 0x398   :  { %v1233_v62 = vadd.f32 %v1232_v58, %v1064_v59 }
 0x399   :  { %v1234_v61 = vpop.f32.mrf.mxu1 }
 0x39a   :  { %v1235_v60 = vadd.f32 %v1234_v61, %v1064_v59 }
 0x39c   :  { %v1239_v63 = vcombine.low %v1233_v62, %v1235_v60 }
 0x39e   :  { %v1246_v0 = vrot.slane %v1239_v63, %v1245_v43 }
 0x3a0   :  { %v1253_v2 = vrot.slane %v1246_v0, %v1245_v43 }
 0x3a2   :  { %1259 = vst.msk [vmem:[%s2218_s6] sm:$0x3] %vm1257_vm3, %v1253_v2 }

</bundles_post_ra>
